<compile_context>
chip_gen: v7x
topology: tpu7x:2x2x1
jax: 0.10.0
libtpu: 0.0.40
codegen_flags: <defaults>
</compile_context>

<pallas_src>
import math
import functools

import jax
import jax.numpy as jnp
from jax.experimental import pallas as pl
from jax.experimental.pallas import tpu as pltpu

_SQRT2 = math.sqrt(2.0)


def _mapping_kernel(x_ref, w_ref, b_ref, o_ref, *, n_layers: int, compute_dtype):
    """Whole mapping network for one batch tile.

    x_ref: (TB, D)     input styles tile (f32)
    w_ref: (L, D, D)   pre-scaled weights, layout (layer, in, out); the sqrt(2)
                       gain of layer l-1 is folded into layer l's weights.
    b_ref: (L, 1, D)   pre-scaled biases (f32)
    o_ref: (TB, D)     output tile
    """
    x = x_ref[...].astype(jnp.float32)

    # --- PixelNorm (reduce over feature axis) ---
    ms = jnp.mean(x * x, axis=-1, keepdims=True)
    x = x * jax.lax.rsqrt(ms + 1e-8)

    neg = jnp.float32(0.2)
    pos_last = jnp.float32(_SQRT2)
    neg_last = jnp.float32(0.2 * _SQRT2)

    # --- EqualLinear stack, fully VMEM-resident (MXU matmuls, f32 accumulate) ---
    for l in range(n_layers):
        w = w_ref[l]                               # (D, D) in->out, compute_dtype
        b = b_ref[l]                               # (1, D), f32
        y = jnp.dot(x.astype(compute_dtype), w,
                    preferred_element_type=jnp.float32) + b
        if l == n_layers - 1:
            # Last layer carries the un-folded sqrt(2) gain: single select of
            # two pre-multiplied slopes.
            x = jnp.where(y >= 0.0, pos_last * y, neg_last * y)
        else:
            # Intermediate layers: gain folded into the next layer's weights.
            x = jnp.where(y >= 0.0, y, neg * y)

    o_ref[...] = x.astype(o_ref.dtype)


def prepare_mapping_params(weights, biases, *, lr_mul=0.01,
                           compute_dtype=jnp.bfloat16):
    """One-time parameter glue: equalized-lr scale, transpose to (in, out),
    sqrt(2) gain folding, and cast to the matmul compute dtype.

    weights: (L, out, in) raw EqualLinear weights; biases: (L, out).
    Hoist this out of the per-step path when the weights are static.
    """
    L, out_dim, in_dim = weights.shape
    scale = (1.0 / math.sqrt(in_dim)) * lr_mul
    w_eff = jnp.transpose(weights, (0, 2, 1)).astype(jnp.float32) * scale  # (L, in, out)
    if L > 1:
        # Fold layer l's post-activation sqrt(2) gain into layer l+1's weights;
        # the final layer's gain is applied inside the kernel.
        gains = jnp.concatenate(
            [jnp.ones((1, 1, 1), jnp.float32),
             jnp.full((L - 1, 1, 1), _SQRT2, jnp.float32)], axis=0)
        w_eff = w_eff * gains
    w_eff = w_eff.astype(compute_dtype)
    b_eff = (biases.astype(jnp.float32) * lr_mul).reshape(L, 1, out_dim)
    return w_eff, b_eff


def mapping_network_apply(x, w_eff, b_eff, *, max_tb=256):
    """x: (B, D) f32; w_eff: (L, D, D) pre-scaled (in, out); b_eff: (L, 1, D)."""
    B, D = x.shape
    L = w_eff.shape[0]
    compute_dtype = w_eff.dtype

    # --- batch tile: multiple of 8, big enough to feed the MXU M dimension ---
    tb = min(max_tb, ((B + 7) // 8) * 8)
    tb = max(8, (tb // 8) * 8)
    # Keep >= 2 grid steps when the batch allows it, so the "parallel" batch
    # axis can be sharded across v7x's two TensorCores.
    if pl.cdiv(B, tb) < 2 and B >= 16:
        tb = max(8, ((B // 2) // 8) * 8)
    grid_b = pl.cdiv(B, tb)
    Bp = grid_b * tb
    if Bp != B:
        x = jnp.pad(x, ((0, Bp - B), (0, 0)))   # ragged last tile via zero-padding

    # --- VMEM budget (Pallas double-buffers every operand block). Only raise
    # the scoped limit when the footprint is large; cap at v7x's 64 MiB. ---
    itemsize = jnp.dtype(compute_dtype).itemsize
    est = (2 * L * D * D * itemsize          # weights (double-buffered)
           + 2 * L * D * 4                   # biases
           + 4 * tb * D * 4                  # in + out tiles, double-buffered
           + (4 << 20))                      # activation temps / headroom
    vmem_limit = min(est, 64 << 20) if est > (28 << 20) else None

    cost = pl.CostEstimate(
        flops=2 * Bp * D * D * L,
        transcendentals=Bp,
        bytes_accessed=2 * Bp * D * 4 + L * D * D * itemsize + L * D * 4,
    )

    kernel = functools.partial(_mapping_kernel, n_layers=L,
                               compute_dtype=compute_dtype)

    out = pl.pallas_call(
        kernel,
        out_shape=jax.ShapeDtypeStruct((Bp, D), x.dtype),
        grid_spec=pltpu.PrefetchScalarGridSpec(
            num_scalar_prefetch=0,
            grid=(grid_b,),
            in_specs=[
                pl.BlockSpec((tb, D), lambda i: (i, 0)),
                # Weight/bias block indices are constant across the grid, so
                # they are only DMA'd once; the second pipeline buffer is
                # accounted for in the VMEM estimate above.
                pl.BlockSpec((L, D, D), lambda i: (0, 0, 0)),
                pl.BlockSpec((L, 1, D), lambda i: (0, 0, 0)),
            ],
            out_specs=pl.BlockSpec((tb, D), lambda i: (i, 0)),
        ),
        compiler_params=pltpu.CompilerParams(
            dimension_semantics=("parallel",),
            vmem_limit_bytes=vmem_limit,
        ),
        cost_estimate=cost,
    )(x, w_eff, b_eff)

    return out[:B] if Bp != B else out


def mapping_network(x, weights, biases, *, lr_mul=0.01,
                    compute_dtype=jnp.bfloat16, max_tb=256):
    """Convenience wrapper: prepare params then run the kernel."""
    w_eff, b_eff = prepare_mapping_params(weights, biases, lr_mul=lr_mul,
                                          compute_dtype=compute_dtype)
    return mapping_network_apply(x, w_eff, b_eff, max_tb=max_tb)


def mapping_network_ref(x, weights, biases, *, lr_mul=0.01):
    """Pure-JAX reference mirroring the PyTorch forward."""
    D = x.shape[-1]
    scale = (1.0 / math.sqrt(D)) * lr_mul
    y = x * jax.lax.rsqrt(jnp.mean(x * x, axis=-1, keepdims=True) + 1e-8)
    for l in range(weights.shape[0]):
        y = y @ (weights[l] * scale).T + biases[l] * lr_mul
        y = jnp.where(y >= 0, 0.2 * y * 0 + y, 0.2 * y) * _SQRT2
    return y


if __name__ == "__main__":
    style_dim = 128
    n_layers = 4
    batch = 8
    lr_mul = 0.01

    key = jax.random.PRNGKey(0)
    kx, kw = jax.random.split(key)

    x = jax.random.normal(kx, (batch, style_dim), dtype=jnp.float32)
    # EqualLinear init: weight = randn(out, in) / lr_mul ; bias = zeros(out)
    weights = jax.random.normal(
        kw, (n_layers, style_dim, style_dim), dtype=jnp.float32) / lr_mul
    biases = jnp.zeros((n_layers, style_dim), dtype=jnp.float32)

    ref = mapping_network_ref(x, weights, biases, lr_mul=lr_mul)

    # f32 path: tight parity with the PyTorch forward.
    w32, b32 = prepare_mapping_params(weights, biases, lr_mul=lr_mul,
                                      compute_dtype=jnp.float32)
    out32 = jax.block_until_ready(mapping_network_apply(x, w32, b32))
    assert out32.shape == (batch, style_dim)
    assert jnp.allclose(out32, ref, atol=1e-4, rtol=1e-4), "f32 mismatch vs reference"

    # bf16-matmul / f32-accumulate path (MXU-native on v6e/v7x): looser tolerance.
    wbf, bbf = prepare_mapping_params(weights, biases, lr_mul=lr_mul,
                                      compute_dtype=jnp.bfloat16)
    outbf = jax.block_until_ready(mapping_network_apply(x, wbf, bbf))
    assert outbf.shape == (batch, style_dim)
    assert jnp.allclose(outbf, ref, atol=5e-2, rtol=5e-2), "bf16 mismatch vs reference"

    print("KERNEL_OK")
</pallas_src>

<mosaic_0001>
module attributes {stable_mosaic.version = 11 : i64} {
  func.func @_mapping_kernel(%arg0: i32, %arg1: memref<8x128xf32, #tpu.memory_space<vmem>>, %arg2: memref<4x128x128xf32, #tpu.memory_space<vmem>>, %arg3: memref<4x1x128xf32, #tpu.memory_space<vmem>>, %arg4: memref<8x128xf32, #tpu.memory_space<vmem>>) attributes {dimension_semantics = [#tpu.dimension_semantics<parallel>], iteration_bounds = array<i64: 1>, scalar_prefetch = 0 : i64, scratch_operands = 0 : i64, tpu.core_type = #tpu.core_type<tc>, window_params = [{transform_indices = @transform_0, window_bounds = array<i64: 8, 128>}, {pipeline_mode = #tpu.pipeline_mode<synchronous>, transform_indices = @transform_1, window_bounds = array<i64: 4, 128, 128>}, {pipeline_mode = #tpu.pipeline_mode<synchronous>, transform_indices = @transform_2, window_bounds = array<i64: 4, 1, 128>}, {transform_indices = @transform_3, window_bounds = array<i64: 8, 128>}]} {
    %c0 = arith.constant 0 : index
    %c0_0 = arith.constant 0 : index
    %0 = vector.load %arg1[%c0, %c0_0] : memref<8x128xf32, #tpu.memory_space<vmem>>, vector<8x128xf32>
    %1 = arith.mulf %0, %0 : vector<8x128xf32>
    %cst = arith.constant dense<0.000000e+00> : vector<8xf32>
    %2 = vector.multi_reduction <add>, %1, %cst [1] : vector<8x128xf32> to vector<8xf32>
    %3 = vector.shape_cast %2 : vector<8xf32> to vector<8x1xf32>
    %cst_1 = arith.constant 1.280000e+02 : f32
    %4 = vector.broadcast %cst_1 : f32 to vector<8x1xf32>
    %5 = arith.divf %3, %4 : vector<8x1xf32>
    %cst_2 = arith.constant 9.99999993E-9 : f32
    %6 = vector.broadcast %cst_2 : f32 to vector<8x1xf32>
    %7 = arith.addf %5, %6 : vector<8x1xf32>
    %8 = math.rsqrt %7 : vector<8x1xf32>
    %9 = vector.broadcast %8 : vector<8x1xf32> to vector<8x128xf32>
    %10 = arith.mulf %0, %9 : vector<8x128xf32>
    %c0_3 = arith.constant 0 : index
    %c0_4 = arith.constant 0 : index
    %c0_5 = arith.constant 0 : index
    %11 = vector.load %arg2[%c0_3, %c0_4, %c0_5] : memref<4x128x128xf32, #tpu.memory_space<vmem>>, vector<1x128x128xf32>
    %12 = vector.shape_cast %11 : vector<1x128x128xf32> to vector<128x128xf32>
    %c0_6 = arith.constant 0 : index
    %c0_7 = arith.constant 0 : index
    %c0_8 = arith.constant 0 : index
    %13 = vector.load %arg3[%c0_6, %c0_7, %c0_8] : memref<4x1x128xf32, #tpu.memory_space<vmem>>, vector<1x1x128xf32>
    %14 = vector.shape_cast %13 : vector<1x1x128xf32> to vector<1x128xf32>
    %cst_9 = arith.constant dense<0.000000e+00> : vector<8x128xf32>
    %15 = tpu.matmul %10, %12, %cst_9 {dimension_numbers = #tpu.dot_dimension_numbers<[1], [0], [0], [1], [0, 0, 1, 1], [], []>} : vector<8x128xf32>, vector<128x128xf32>, vector<8x128xf32> -> vector<8x128xf32>
    %16 = vector.broadcast %14 : vector<1x128xf32> to vector<8x128xf32>
    %17 = arith.addf %15, %16 : vector<8x128xf32>
    %cst_10 = arith.constant 0.000000e+00 : f32
    %18 = vector.broadcast %cst_10 : f32 to vector<8x128xf32>
    %19 = arith.cmpf oge, %17, %18 : vector<8x128xf32>
    %cst_11 = arith.constant 2.000000e-01 : f32
    %20 = vector.broadcast %cst_11 : f32 to vector<8x128xf32>
    %21 = arith.mulf %20, %17 : vector<8x128xf32>
    %22 = arith.select %19, %17, %21 : vector<8x128xi1>, vector<8x128xf32>
    %c1 = arith.constant 1 : index
    %c0_12 = arith.constant 0 : index
    %c0_13 = arith.constant 0 : index
    %23 = vector.load %arg2[%c1, %c0_12, %c0_13] : memref<4x128x128xf32, #tpu.memory_space<vmem>>, vector<1x128x128xf32>
    %24 = vector.shape_cast %23 : vector<1x128x128xf32> to vector<128x128xf32>
    %c1_14 = arith.constant 1 : index
    %c0_15 = arith.constant 0 : index
    %c0_16 = arith.constant 0 : index
    %25 = vector.load %arg3[%c1_14, %c0_15, %c0_16] : memref<4x1x128xf32, #tpu.memory_space<vmem>>, vector<1x1x128xf32>
    %26 = vector.shape_cast %25 : vector<1x1x128xf32> to vector<1x128xf32>
    %cst_17 = arith.constant dense<0.000000e+00> : vector<8x128xf32>
    %27 = tpu.matmul %22, %24, %cst_17 {dimension_numbers = #tpu.dot_dimension_numbers<[1], [0], [0], [1], [0, 0, 1, 1], [], []>} : vector<8x128xf32>, vector<128x128xf32>, vector<8x128xf32> -> vector<8x128xf32>
    %28 = vector.broadcast %26 : vector<1x128xf32> to vector<8x128xf32>
    %29 = arith.addf %27, %28 : vector<8x128xf32>
    %cst_18 = arith.constant 0.000000e+00 : f32
    %30 = vector.broadcast %cst_18 : f32 to vector<8x128xf32>
    %31 = arith.cmpf oge, %29, %30 : vector<8x128xf32>
    %cst_19 = arith.constant 2.000000e-01 : f32
    %32 = vector.broadcast %cst_19 : f32 to vector<8x128xf32>
    %33 = arith.mulf %32, %29 : vector<8x128xf32>
    %34 = arith.select %31, %29, %33 : vector<8x128xi1>, vector<8x128xf32>
    %c2 = arith.constant 2 : index
    %c0_20 = arith.constant 0 : index
    %c0_21 = arith.constant 0 : index
    %35 = vector.load %arg2[%c2, %c0_20, %c0_21] : memref<4x128x128xf32, #tpu.memory_space<vmem>>, vector<1x128x128xf32>
    %36 = vector.shape_cast %35 : vector<1x128x128xf32> to vector<128x128xf32>
    %c2_22 = arith.constant 2 : index
    %c0_23 = arith.constant 0 : index
    %c0_24 = arith.constant 0 : index
    %37 = vector.load %arg3[%c2_22, %c0_23, %c0_24] : memref<4x1x128xf32, #tpu.memory_space<vmem>>, vector<1x1x128xf32>
    %38 = vector.shape_cast %37 : vector<1x1x128xf32> to vector<1x128xf32>
    %cst_25 = arith.constant dense<0.000000e+00> : vector<8x128xf32>
    %39 = tpu.matmul %34, %36, %cst_25 {dimension_numbers = #tpu.dot_dimension_numbers<[1], [0], [0], [1], [0, 0, 1, 1], [], []>} : vector<8x128xf32>, vector<128x128xf32>, vector<8x128xf32> -> vector<8x128xf32>
    %40 = vector.broadcast %38 : vector<1x128xf32> to vector<8x128xf32>
    %41 = arith.addf %39, %40 : vector<8x128xf32>
    %cst_26 = arith.constant 0.000000e+00 : f32
    %42 = vector.broadcast %cst_26 : f32 to vector<8x128xf32>
    %43 = arith.cmpf oge, %41, %42 : vector<8x128xf32>
    %cst_27 = arith.constant 2.000000e-01 : f32
    %44 = vector.broadcast %cst_27 : f32 to vector<8x128xf32>
    %45 = arith.mulf %44, %41 : vector<8x128xf32>
    %46 = arith.select %43, %41, %45 : vector<8x128xi1>, vector<8x128xf32>
    %c3 = arith.constant 3 : index
    %c0_28 = arith.constant 0 : index
    %c0_29 = arith.constant 0 : index
    %47 = vector.load %arg2[%c3, %c0_28, %c0_29] : memref<4x128x128xf32, #tpu.memory_space<vmem>>, vector<1x128x128xf32>
    %48 = vector.shape_cast %47 : vector<1x128x128xf32> to vector<128x128xf32>
    %c3_30 = arith.constant 3 : index
    %c0_31 = arith.constant 0 : index
    %c0_32 = arith.constant 0 : index
    %49 = vector.load %arg3[%c3_30, %c0_31, %c0_32] : memref<4x1x128xf32, #tpu.memory_space<vmem>>, vector<1x1x128xf32>
    %50 = vector.shape_cast %49 : vector<1x1x128xf32> to vector<1x128xf32>
    %cst_33 = arith.constant dense<0.000000e+00> : vector<8x128xf32>
    %51 = tpu.matmul %46, %48, %cst_33 {dimension_numbers = #tpu.dot_dimension_numbers<[1], [0], [0], [1], [0, 0, 1, 1], [], []>} : vector<8x128xf32>, vector<128x128xf32>, vector<8x128xf32> -> vector<8x128xf32>
    %52 = vector.broadcast %50 : vector<1x128xf32> to vector<8x128xf32>
    %53 = arith.addf %51, %52 : vector<8x128xf32>
    %cst_34 = arith.constant 0.000000e+00 : f32
    %54 = vector.broadcast %cst_34 : f32 to vector<8x128xf32>
    %55 = arith.cmpf oge, %53, %54 : vector<8x128xf32>
    %cst_35 = arith.constant 1.41421354 : f32
    %56 = vector.broadcast %cst_35 : f32 to vector<8x128xf32>
    %57 = arith.mulf %56, %53 : vector<8x128xf32>
    %cst_36 = arith.constant 0.282842726 : f32
    %58 = vector.broadcast %cst_36 : f32 to vector<8x128xf32>
    %59 = arith.mulf %58, %53 : vector<8x128xf32>
    %60 = arith.select %55, %57, %59 : vector<8x128xi1>, vector<8x128xf32>
    %c0_37 = arith.constant 0 : index
    %c0_38 = arith.constant 0 : index
    %61 = vector.load %arg4[%c0_37, %c0_38] : memref<8x128xf32, #tpu.memory_space<vmem>>, vector<8x128xf32>
    tpu.vector_store %arg4[%c0_37, %c0_38], %60 {strides = array<i32>} : memref<8x128xf32, #tpu.memory_space<vmem>>, vector<8x128xf32>,
    return
  }
  func.func @transform_0(%arg0: i32) -> (i32, i32) {
    %c0_i32 = arith.constant 0 : i32
    %c0_i32_0 = arith.constant 0 : i32
    return %arg0, %c0_i32 : i32, i32
  }
  func.func @transform_1(%arg0: i32) -> (i32, i32, i32) {
    %c0_i32 = arith.constant 0 : i32
    %c0_i32_0 = arith.constant 0 : i32
    %c0_i32_1 = arith.constant 0 : i32
    %c0_i32_2 = arith.constant 0 : i32
    return %c0_i32, %c0_i32_0, %c0_i32_1 : i32, i32, i32
  }
  func.func @transform_2(%arg0: i32) -> (i32, i32, i32) {
    %c0_i32 = arith.constant 0 : i32
    %c0_i32_0 = arith.constant 0 : i32
    %c0_i32_1 = arith.constant 0 : i32
    %c0_i32_2 = arith.constant 0 : i32
    return %c0_i32, %c0_i32_0, %c0_i32_1 : i32, i32, i32
  }
  func.func @transform_3(%arg0: i32) -> (i32, i32) {
    %c0_i32 = arith.constant 0 : i32
    %c0_i32_0 = arith.constant 0 : i32
    return %arg0, %c0_i32 : i32, i32
  }
}

</mosaic_0001>

<bundles_post_ra>
// kernel: tpu_custom_call.1
= control target key start
LH: loop header
LB: loop body
LE: loop exit
PB: predicated region body
PF: predicated region fallthrough
CT: control target
= control target key end

     0   :  { %8 = vsyncpa [#allocation3], 0  ;;  %s979_s0 = inlined_call_operand.hbm [shape: f32[8,128], index: 0, kind: input, shape index: {}]   ;;  %s980_s1 = inlined_call_operand.hbm [shape: f32[4,128,128], index: 1, kind: input, shape index: {}]   ;;  %s981_s2 = inlined_call_operand.vmem [shape: f32[4,1,128], index: 2, kind: input, shape index: {}]   ;;  %s982_s3 = inlined_call_operand.hbm [shape: f32[8,128], index: 3, kind: output, shape index: {}]  }
   0x1   :  { %9 = vsyncpa [#allocation6], 0 }
   0x2   :  { %10 = vsyncpa [#allocation4], 0  ;;  %s851_s12 = smov [#allocation2]   ;;  %s852_s14 = smov [#allocation5]  }
   0x3   :  { %s17_s13 = sshll.u32 %s851_s12, 4  ;;  %s26_s15 = sshll.u32 %s852_s14, 4  ;;  %s18_s13 = int_to_ptr.vmem [resolvable:$true] %s17_s13  ;;  %s879_s15 = int_to_ptr.vmem [resolvable:$true] %s26_s15 }
   0x4   :  { %s779_s18 = scalar_lea.hbm %s979_s0, 128 }
   0x5   :  { %p780_p0 = scmp.ne.s32.totalorder %s979_s0, %s779_s18  ;;  %p783_p1 = scmp.lt.u32.totalorder %s779_s18, %s979_s0 }
   0x7   :  { %p785_p2 = pnand %p783_p1, %p780_p0 }
   0x9   :  { %788 = shalt.err (!%p785_p2)
}
   0xa   :  { %s789_s23 = scalar_lea.vmem %s18_s13, 128  ;;  %p794_p4 = scmp.lt.s32.totalorder %s18_s13, %s18_s13 }
   0xb   :  { %p790_p3 = scmp.ne.s32.totalorder %s18_s13, %s789_s23  ;;  %p795_p5 = scmp.lt.s32.totalorder %s789_s23, %s789_s23 }
   0xd   :  { %p796_p6 = por %p795_p5, %p794_p4 }
   0xf   :  { %p797_p7 = pnand %p796_p6, %p790_p3 }
  0x11   :  { %800 = shalt.err (!%p797_p7)
}
  0x12   :  { %20 = dma.hbm_to_vmem [thread:$0]  %s979_s0, 128, %s18_s13, [#allocation3]  }
  0x13   :  { %s801_s28 = scalar_lea.hbm %s980_s1, 8192 }
  0x14   :  { %p802_p8 = scmp.ne.s32.totalorder %s980_s1, %s801_s28  ;;  %p805_p9 = scmp.lt.u32.totalorder %s801_s28, %s980_s1 }
  0x16   :  { %p807_p10 = pnand %p805_p9, %p802_p8 }
  0x18   :  { %810 = shalt.err (!%p807_p10)
}
  0x19   :  { %s811_s6 = scalar_lea.vmem %s879_s15, 8192  ;;  %p816_p12 = scmp.lt.s32.totalorder %s879_s15, %s879_s15 }
  0x1a   :  { %p812_p11 = scmp.ne.s32.totalorder %s879_s15, %s811_s6  ;;  %p817_p13 = scmp.lt.s32.totalorder %s811_s6, %s811_s6 }
  0x1c   :  { %p818_p0 = por %p817_p13, %p816_p12 }
  0x1e   :  { %p819_p1 = pnand %p818_p0, %p812_p11 }
  0x20   :  { %822 = shalt.err (!%p819_p1)
}
  0x21   :  { %s853_s0 = smov 128   ;;  %s854_s7 = smov 8  }
  0x22   :  { %32 = dma.hbm_to_vmem [thread:$0]  %s980_s1, 8192, %s879_s15, [#allocation6], %s853_s0, %s853_s0, %s854_s7  }
  0x23   :  { %845 = dma.done.wait [#allocation3], 128  }
  0x24   :  { %846 = vsyncadd [#allocation3], 4294967168 }
  0x25   :  { %847 = dma.done.wait [#allocation6], 8192  }
  0x26   :  { %848 = vsyncadd [#allocation6], 4294959104  ;;  %v855_v0 = vmov 0.0|0.0   ;;  %v912_v1 = vld [vmem:[#allocation2] sm:$0xff]  ;;  %v50_v2 = vld [vmem:[#allocation5] sm:$0xff]  ;;  %vm856_vm0 = vmmov 0  }
  0x27   :  { %673 = vmatprep.subr.bf16.mxu0 %v855_v0  ;;  %697 = vmatprep.subr.bf16.mxu1 %v855_v0  ;;  %v51_v3 = vld [vmem:[#allocation5 + $0x8] sm:$0xff]  ;;  %v42_v4 = vmul.f32 %v912_v1, %v912_v1  ;;  %v52_v6 = vld [vmem:[#allocation5 + $0x10] sm:$0xff]  ;;  %v53_v7 = vld [vmem:[#allocation5 + $0x18] sm:$0xff]  ;;  %v857_v23 = vmov 0.0   ;;  %s858_s17 = smov [#allocation7]  }
  0x28   :  { %v674_v5 = vpack.c.bf16 %v51_v3, %v50_v2  ;;  %v677_v8 = vpack.c.bf16 %v53_v7, %v52_v6  ;;  %v54_v9 = vld [vmem:[#allocation5 + $0x20] sm:$0xff]  ;;  %v55_v10 = vld [vmem:[#allocation5 + $0x28] sm:$0xff]  ;;  %v56_v12 = vld [vmem:[#allocation5 + $0x30] sm:$0xff]  ;;  %565 = vmatprep.mubr.msk.f32.mxu0 %vm856_vm0, %v857_v23  ;;  %600 = vmatprep.mubr.msk.f32.mxu1 %vm856_vm0, %v857_v23  ;;  %s448_s18 = sshll.u32 %s858_s17, 4  ;;  %s449_s18 = int_to_ptr.vmem [resolvable:$true] %s448_s18 }
  0x29   :  { %43 = vadd.xlane.f32.xlu0 %v42_v4  ;;  %v680_v11 = vpack.c.bf16 %v55_v10, %v54_v9  ;;  %v57_v13 = vld [vmem:[#allocation5 + $0x38] sm:$0xff]  ;;  %v58_v15 = vld [vmem:[#allocation5 + $0x40] sm:$0xff]  ;;  %v59_v16 = vld [vmem:[#allocation5 + $0x48] sm:$0xff]  ;;  %s823_s19 = scalar_lea.vmem %s449_s18, 128  ;;  %p828_p3 = scmp.lt.s32.totalorder %s449_s18, %s449_s18 }
  0x2a   :  { %675 = vmatpush3.bf16.msra.mxu0 %v674_v5  ;;  %v683_v14 = vpack.c.bf16 %v57_v13, %v56_v12  ;;  %v686_v17 = vpack.c.bf16 %v59_v16, %v58_v15  ;;  %v60_v18 = vld [vmem:[#allocation5 + $0x50] sm:$0xff]  ;;  %v61_v19 = vld [vmem:[#allocation5 + $0x58] sm:$0xff]  ;;  %v62_v21 = vld [vmem:[#allocation5 + $0x60] sm:$0xff]  ;;  %p824_p2 = scmp.ne.s32.totalorder %s449_s18, %s823_s19  ;;  %p829_p4 = scmp.lt.s32.totalorder %s823_s19, %s823_s19 }
  0x2b   :  { %676 = vmatprep.subr.bf16.mxu0 %v855_v0  ;;  %v689_v20 = vpack.c.bf16 %v61_v19, %v60_v18  ;;  %v63_v22 = vld [vmem:[#allocation5 + $0x68] sm:$0xff]  ;;  %v64_v25 = vld [vmem:[#allocation5 + $0x70] sm:$0xff]  ;;  %v65_v26 = vld [vmem:[#allocation5 + $0x78] sm:$0xff] }
  0x2c   :  { %v692_v24 = vpack.c.bf16 %v63_v22, %v62_v21  ;;  %v695_v27 = vpack.c.bf16 %v65_v26, %v64_v25  ;;  %v147_v28 = vld [vmem:[#allocation5 + $0x80] sm:$0xff]  ;;  %v148_v29 = vld [vmem:[#allocation5 + $0x88] sm:$0xff]  ;;  %v149_v30 = vld [vmem:[#allocation5 + $0x90] sm:$0xff]  ;;  %p830_p5 = por %p829_p4, %p828_p3 }
  0x2d   :  { %v698_v31 = vpack.c.bf16 %v148_v29, %v147_v28  ;;  %v150_v32 = vld [vmem:[#allocation5 + $0x98] sm:$0xff]  ;;  %v151_v34 = vld [vmem:[#allocation5 + $0xa0] sm:$0xff]  ;;  %v152_v35 = vld [vmem:[#allocation5 + $0xa8] sm:$0xff] }
  0x2e   :  { %678 = vmatpush3.bf16.msra.mxu0 %v677_v8  ;;  %v701_v33 = vpack.c.bf16 %v150_v32, %v149_v30  ;;  %v704_v36 = vpack.c.bf16 %v152_v35, %v151_v34  ;;  %v153_v37 = vld [vmem:[#allocation5 + $0xb0] sm:$0xff]  ;;  %v154_v38 = vld [vmem:[#allocation5 + $0xb8] sm:$0xff]  ;;  %v155_v40 = vld [vmem:[#allocation5 + $0xc0] sm:$0xff]  ;;  %p831_p6 = pnand %p830_p5, %p824_p2 }
  0x2f   :  { %679 = vmatprep.subr.bf16.mxu0 %v855_v0  ;;  %699 = vmatpush3.bf16.msra.mxu1 %v698_v31  ;;  %v707_v39 = vpack.c.bf16 %v154_v38, %v153_v37  ;;  %v156_v41 = vld [vmem:[#allocation5 + $0xc8] sm:$0xff]  ;;  %v157_v43 = vld [vmem:[#allocation5 + $0xd0] sm:$0xff]  ;;  %v158_v44 = vld [vmem:[#allocation5 + $0xd8] sm:$0xff] }
  0x30   :  { %700 = vmatprep.subr.bf16.mxu1 %v855_v0  ;;  %v710_v42 = vpack.c.bf16 %v156_v41, %v155_v40  ;;  %v713_v45 = vpack.c.bf16 %v158_v44, %v157_v43  ;;  %v159_v46 = vld [vmem:[#allocation5 + $0xe0] sm:$0xff]  ;;  %v160_v47 = vld [vmem:[#allocation5 + $0xe8] sm:$0xff]  ;;  %v161_v54 = vld [vmem:[#allocation5 + $0xf0] sm:$0xff] }
  0x31   :  { %v716_v48 = vpack.c.bf16 %v160_v47, %v159_v46  ;;  %v162_v55 = vld [vmem:[#allocation5 + $0xf8] sm:$0xff]  ;;  %v245_v57 = vld [vmem:[#allocation5 + $0x100] sm:$0xff]  ;;  %v246_v58 = vld [vmem:[#allocation5 + $0x108] sm:$0xff] }
  0x32   :  { %681 = vmatpush3.bf16.msra.mxu0 %v680_v11  ;;  %v719_v56 = vpack.c.bf16 %v162_v55, %v161_v54  ;;  %v247_v59 = vld [vmem:[#allocation5 + $0x110] sm:$0xff]  ;;  %v722_v60 = vpack.c.bf16 %v246_v58, %v245_v57  ;;  %v248_v61 = vld [vmem:[#allocation5 + $0x118] sm:$0xff]  ;;  %v249_v63 = vld [vmem:[#allocation5 + $0x120] sm:$0xff] }
  0x33   :  { %682 = vmatprep.subr.bf16.mxu0 %v855_v0  ;;  %702 = vmatpush3.bf16.msra.mxu1 %v701_v33  ;;  %v725_v62 = vpack.c.bf16 %v248_v61, %v247_v59  ;;  %v251_v3 = vld [vmem:[#allocation5 + $0x130] sm:$0xff]  ;;  %v252_v4 = vld [vmem:[#allocation5 + $0x138] sm:$0xff]  ;;  %v253_v6 = vld [vmem:[#allocation5 + $0x140] sm:$0xff] }
  0x34   :  { %703 = vmatprep.subr.bf16.mxu1 %v855_v0  ;;  %v731_v5 = vpack.c.bf16 %v252_v4, %v251_v3  ;;  %v254_v7 = vld [vmem:[#allocation5 + $0x148] sm:$0xff]  ;;  %v255_v9 = vld [vmem:[#allocation5 + $0x150] sm:$0xff]  ;;  %v256_v10 = vld [vmem:[#allocation5 + $0x158] sm:$0xff] }
  0x35   :  { %v734_v8 = vpack.c.bf16 %v254_v7, %v253_v6  ;;  %v737_v11 = vpack.c.bf16 %v256_v10, %v255_v9  ;;  %v257_v12 = vld [vmem:[#allocation5 + $0x160] sm:$0xff]  ;;  %v258_v13 = vld [vmem:[#allocation5 + $0x168] sm:$0xff]  ;;  %v458_v15 = vld [vmem:[%s981_s2] ss:$0 sm:$0xff] }
  0x36   :  { %684 = vmatpush3.bf16.msra.mxu0 %v683_v14  ;;  %v740_v14 = vpack.c.bf16 %v258_v13, %v257_v12  ;;  %v259_v21 = vld [vmem:[#allocation5 + $0x170] sm:$0xff]  ;;  %v260_v22 = vld [vmem:[#allocation5 + $0x178] sm:$0xff]  ;;  %v343_v25 = vld [vmem:[#allocation5 + $0x180] sm:$0xff] }
  0x37   :  { %685 = vmatprep.subr.bf16.mxu0 %v855_v0  ;;  %705 = vmatpush3.bf16.msra.mxu1 %v704_v36  ;;  %v344_v26 = vld [vmem:[#allocation5 + $0x188] sm:$0xff]  ;;  %v346_v29 = vld [vmem:[#allocation5 + $0x198] sm:$0xff]  ;;  %v347_v31 = vld [vmem:[#allocation5 + $0x1a0] sm:$0xff] }
  0x38   :  { %706 = vmatprep.subr.bf16.mxu1 %v855_v0  ;;  %v746_v28 = vpack.c.bf16 %v344_v26, %v343_v25  ;;  %v348_v32 = vld [vmem:[#allocation5 + $0x1a8] sm:$0xff]  ;;  %v350_v34 = vld [vmem:[#allocation5 + $0x1b8] sm:$0xff]  ;;  %v351_v36 = vld [vmem:[#allocation5 + $0x1c0] sm:$0xff] }
  0x39   :  { %v752_v33 = vpack.c.bf16 %v348_v32, %v347_v31  ;;  %v352_v37 = vld [vmem:[#allocation5 + $0x1c8] sm:$0xff]  ;;  %v354_v40 = vld [vmem:[#allocation5 + $0x1d8] sm:$0xff] }
  0x3a   :  { %687 = vmatpush3.bf16.msra.mxu0 %v686_v17  ;;  %v758_v38 = vpack.c.bf16 %v352_v37, %v351_v36  ;;  %v356_v43 = vld [vmem:[#allocation5 + $0x1e8] sm:$0xff]  ;;  %v462_v54 = vld [vmem:[%s981_s2 + $0x2] ss:$0 sm:$0xff]  ;;  %v464_v59 = vld [vmem:[%s981_s2 + $0x3] ss:$0 sm:$0xff] }
  0x3b   :  { %688 = vmatprep.subr.bf16.mxu0 %v855_v0  ;;  %708 = vmatpush3.bf16.msra.mxu1 %v707_v39  ;;  %v353_v39 = vld [vmem:[#allocation5 + $0x1d0] sm:$0xff] }
  0x3c   :  { %709 = vmatprep.subr.bf16.mxu1 %v855_v0  ;;  %v761_v41 = vpack.c.bf16 %v354_v40, %v353_v39 }
  0x3e   :  { %690 = vmatpush3.bf16.msra.mxu0 %v689_v20 }
  0x3f   :  { %691 = vmatprep.subr.bf16.mxu0 %v855_v0  ;;  %711 = vmatpush3.bf16.msra.mxu1 %v710_v42  ;;  %v355_v42 = vld [vmem:[#allocation5 + $0x1e0] sm:$0xff] }
  0x40   :  { %712 = vmatprep.subr.bf16.mxu1 %v855_v0  ;;  %v764_v44 = vpack.c.bf16 %v356_v43, %v355_v42 }
  0x42   :  { %693 = vmatpush3.bf16.msra.mxu0 %v692_v24  ;;  %v743_v24 = vpack.c.bf16 %v260_v22, %v259_v21 }
  0x43   :  { %694 = vmatprep.subr.bf16.mxu0 %v855_v0  ;;  %714 = vmatpush3.bf16.msra.mxu1 %v713_v45  ;;  %v460_v45 = vld [vmem:[%s981_s2 + $0x1] ss:$0 sm:$0xff] }
  0x44   :  { %715 = vmatprep.subr.bf16.mxu1 %v855_v0 }
  0x46   :  { %696 = vmatpush3.bf16.msra.mxu0 %v695_v27  ;;  %v345_v27 = vld [vmem:[#allocation5 + $0x190] sm:$0xff] }
  0x47   :  { %721 = vmatprep.subr.bf16.mxu0 %v855_v0  ;;  %717 = vmatpush3.bf16.msra.mxu1 %v716_v48  ;;  %v749_v30 = vpack.c.bf16 %v346_v29, %v345_v27 }
  0x48   :  { %718 = vmatprep.subr.bf16.mxu1 %v855_v0 }
  0x4b   :  { %720 = vmatpush3.bf16.msra.mxu1 %v719_v56 }
  0x4c   :  { %745 = vmatprep.subr.bf16.mxu1 %v855_v0 }
  0xb6   :  { %v44_v49 = vpop.xlane.xlu0 %43 }
  0xb7   :  { %v46_v50 = vmul.f32 0.0078125, %v44_v49 }
  0xb9   :  { %v47_v51 = vadd.f32 1e-08, %v46_v50 }
  0xbb   :  { %777 = vrsqrt.f32 %v47_v51  ;;  %v357_v51 = vld [vmem:[#allocation5 + $0x1f0] sm:$0xff] }
  0xc5   :  { %v778_v52 = vpop.eup %777 }
  0xc6   :  { %v49_v53 = vmul.f32 %v778_v52, %v912_v1  ;;  %v250_v1 = vld [vmem:[#allocation5 + $0x128] sm:$0xff]  ;;  %v358_v52 = vld [vmem:[#allocation5 + $0x1f8] sm:$0xff] }
  0xc7   :  { %v728_v2 = vpack.c.bf16 %v250_v1, %v249_v63 }
  0xc8   :  { %566 = vmatmul.mubr.f32.vlgmr.msra.gmra.mrb[0].mxu0 %v49_v53  ;;  %v767_v53 = vpack.c.bf16 %v358_v52, %v357_v51 }
  0xc9   :  { %635 = vmatprep.mubr.msk.f32.mxu0 %vm856_vm0, %v857_v23  ;;  %723 = vmatpush3.bf16.msra.mxu0 %v722_v60 }
  0xca   :  { %724 = vmatprep.subr.bf16.mxu0 %v855_v0 }
  0xcd   :  { %726 = vmatpush3.bf16.msra.mxu0 %v725_v62 }
  0xce   :  { %727 = vmatprep.subr.bf16.mxu0 %v855_v0 }
  0xd1   :  { %729 = vmatpush3.bf16.msra.mxu0 %v728_v2 }
  0xd2   :  { %730 = vmatprep.subr.bf16.mxu0 %v855_v0 }
  0xd5   :  { %732 = vmatpush3.bf16.msra.mxu0 %v731_v5 }
  0xd6   :  { %733 = vmatprep.subr.bf16.mxu0 %v855_v0 }
  0xd9   :  { %735 = vmatpush3.bf16.msra.mxu0 %v734_v8 }
  0xda   :  { %736 = vmatprep.subr.bf16.mxu0 %v855_v0 }
  0xdd   :  { %738 = vmatpush3.bf16.msra.mxu0 %v737_v11 }
  0xde   :  { %739 = vmatprep.subr.bf16.mxu0 %v855_v0 }
  0xe1   :  { %741 = vmatpush3.bf16.msra.mxu0 %v740_v14 }
  0xe2   :  { %742 = vmatprep.subr.bf16.mxu0 %v855_v0 }
  0xe5   :  { %744 = vmatpush3.bf16.msra.mxu0 %v743_v24 }
 0x19b   :  { %v139_v16 = vpop.f32.mrb[0].mxu0 }
 0x19c   :  { %v140_v17 = vadd.f32 %v458_v15, %v139_v16  ;;  %v567_v18 = vpop.f32.mrb[1].mxu0 }
 0x19e   :  { %v144_v19 = vmul.f32 0.2, %v140_v17  ;;  %vm143_vm1 = vcmp.ge.f32.partialorder %v140_v17, 0.0 }
 0x1a0   :  { %v145_v20 = vsel %vm143_vm1, %v140_v17, %v144_v19 }
 0x1a1   :  { %601 = vmatmul.mubr.f32.vlgmr.msra.gmra.mrb[0].mxu1 %v145_v20 }
 0x1a2   :  { %670 = vmatprep.mubr.msk.f32.mxu1 %vm856_vm0, %v857_v23  ;;  %747 = vmatpush3.bf16.msra.mxu1 %v746_v28  ;;  %v349_v23 = vld [vmem:[#allocation5 + $0x1b0] sm:$0xff] }
 0x1a3   :  { %748 = vmatprep.subr.bf16.mxu1 %v855_v0  ;;  %v755_v35 = vpack.c.bf16 %v350_v34, %v349_v23 }
 0x1a6   :  { %750 = vmatpush3.bf16.msra.mxu1 %v749_v30 }
 0x1a7   :  { %751 = vmatprep.subr.bf16.mxu1 %v855_v0 }
 0x1aa   :  { %753 = vmatpush3.bf16.msra.mxu1 %v752_v33 }
 0x1ab   :  { %754 = vmatprep.subr.bf16.mxu1 %v855_v0 }
 0x1ae   :  { %756 = vmatpush3.bf16.msra.mxu1 %v755_v35 }
 0x1af   :  { %757 = vmatprep.subr.bf16.mxu1 %v855_v0 }
 0x1b2   :  { %759 = vmatpush3.bf16.msra.mxu1 %v758_v38 }
 0x1b3   :  { %760 = vmatprep.subr.bf16.mxu1 %v855_v0 }
 0x1b6   :  { %762 = vmatpush3.bf16.msra.mxu1 %v761_v41 }
 0x1b7   :  { %763 = vmatprep.subr.bf16.mxu1 %v855_v0 }
 0x1ba   :  { %765 = vmatpush3.bf16.msra.mxu1 %v764_v44 }
 0x1bb   :  { %766 = vmatprep.subr.bf16.mxu1 %v855_v0 }
 0x1be   :  { %768 = vmatpush3.bf16.msra.mxu1 %v767_v53 }
 0x274   :  { %v237_v46 = vpop.f32.mrb[0].mxu1 }
 0x275   :  { %v238_v47 = vadd.f32 %v460_v45, %v237_v46  ;;  %v602_v48 = vpop.f32.mrb[1].mxu1 }
 0x277   :  { %vm241_vm2 = vcmp.ge.f32.partialorder %v238_v47, 0.0  ;;  %v242_v49 = vmul.f32 0.2, %v238_v47 }
 0x279   :  { %v243_v50 = vsel %vm241_vm2, %v238_v47, %v242_v49 }
 0x27a   :  { %636 = vmatmul.mubr.f32.vlgmr.msra.gmra.mrb[2].mxu0 %v243_v50 }
 0x34d   :  { %v335_v0 = vpop.f32.mrb[2].mxu0 }
 0x34e   :  { %v336_v55 = vadd.f32 %v462_v54, %v335_v0  ;;  %v637_v56 = vpop.f32.mrb[3].mxu0 }
 0x350   :  { %vm339_vm3 = vcmp.ge.f32.partialorder %v336_v55, 0.0  ;;  %v340_v57 = vmul.f32 0.2, %v336_v55 }
 0x352   :  { %v341_v58 = vsel %vm339_vm3, %v336_v55, %v340_v57 }
 0x353   :  { %671 = vmatmul.mubr.f32.vlgmr.msra.gmra.mrb[2].mxu1 %v341_v58 }
 0x426   :  { %v433_v60 = vpop.f32.mrb[2].mxu1 }
 0x427   :  { %v434_v61 = vadd.f32 %v464_v59, %v433_v60  ;;  %v672_v62 = vpop.f32.mrb[3].mxu1 }
 0x429   :  { %v438_v63 = vmul.f32 1.4142135, %v434_v61  ;;  %v439_v1 = vmul.f32 0.28284273, %v434_v61  ;;  %vm437_vm4 = vcmp.ge.f32.partialorder %v434_v61, 0.0 }
 0x42b   :  { %v440_v2 = vsel %vm437_vm4, %v438_v63, %v439_v1 }
 0x42c   :  { %441 = vst [vmem:[#allocation7] sm:$0xff] %v440_v2 }
 0x42d   :  { %834 = shalt.err (!%p831_p6)
}
 0x42e   :  { %s835_s21 = scalar_lea.hbm %s982_s3, 128 }
 0x42f   :  { %p836_p7 = scmp.ne.s32.totalorder %s982_s3, %s835_s21  ;;  %p839_p8 = scmp.lt.u32.totalorder %s835_s21, %s982_s3 }
 0x431   :  { %p841_p9 = pnand %p839_p8, %p836_p7 }
 0x433   :  { %844 = shalt.err (!%p841_p9)
}
 0x434   :  { %451 = dma.vmem_to_hbm [thread:$0]  %s449_s18, 128, %s982_s3, [#allocation4]  }
 0x435   :  { %849 = dma.done.wait [#allocation4], 128  }
 0x436   :  { %850 = vsyncadd [#allocation4], 4294967168 }
 0x437   :  { %455 = vsyncpa [#allocation3], 1 }
 0x438   :  { %456 = vsyncpa [#allocation6], 1 }
 0x439   :  { %457 = vsyncpa [#allocation4], 1 }

</bundles_post_ra>
